<compile_context>
chip_gen: v7x
topology: tpu7x:2x2x1
jax: 0.10.0
libtpu: 0.0.40
codegen_flags: <defaults>
</compile_context>

<pallas_src>
import jax
import jax.numpy as jnp
from jax import lax
from jax.experimental import pallas as pl
from jax.experimental.pallas import tpu as pltpu


# Large finite negative (avoids -inf arithmetic; |q.k| is absorbed by f32
# rounding so masked logits are bit-identical within a row).
_MASK_VALUE = float(-0.7 * float(jnp.finfo(jnp.float32).max))


def _make_attend_kernel(has_bias, scale):
    def kernel(*refs):
        i = 0
        q_ref = refs[i]; i += 1            # (1, TQ, d)
        k_ref = refs[i]; i += 1            # (1, TKV, d)
        v_ref = refs[i]; i += 1            # (1, TKV, d)
        bias_ref = None
        if has_bias:
            bias_ref = refs[i]; i += 1     # (1, TQ, TKV) fused additive bias
        o_ref, qs_ref, m_ref, l_ref, acc_ref = refs[i:i + 5]
        # o_ref: (1, TQ, d) out | qs_ref: (TQ, d) scaled q | m/l: (TQ,1) f32
        # acc_ref: (TQ, d) f32

        kv_idx = pl.program_id(2)

        @pl.when(kv_idx == 0)
        def _init():
            # q block is resident across the whole kv loop: scale it once.
            qs_ref[...] = q_ref[0] * scale
            m_ref[...] = jnp.full_like(m_ref, -jnp.inf)
            l_ref[...] = jnp.zeros_like(l_ref)
            acc_ref[...] = jnp.zeros_like(acc_ref)

        # sim tile = (q*scale) @ k^T, contracting last dims (no materialized
        # transpose), f32 accumulation on the MXU.
        s = lax.dot_general(
            qs_ref[...], k_ref[0], (((1,), (1,)), ((), ())),
            preferred_element_type=jnp.float32)            # (TQ, TKV)

        if has_bias:
            s = s + bias_ref[0].astype(jnp.float32)        # bias/mask fused

        # Online softmax update (all f32).
        m_prev = m_ref[...]                                # (TQ, 1)
        m_new = jnp.maximum(m_prev, jnp.max(s, axis=-1, keepdims=True))
        alpha = jnp.exp(m_prev - m_new)                    # (TQ, 1)
        p = jnp.exp(s - m_new)                             # (TQ, TKV)
        l_ref[...] = alpha * l_ref[...] + jnp.sum(p, axis=-1, keepdims=True)
        acc_ref[...] = alpha * acc_ref[...] + jnp.dot(
            p.astype(v_ref.dtype), v_ref[0],
            preferred_element_type=jnp.float32)
        m_ref[...] = m_new

        @pl.when(kv_idx == pl.num_programs(2) - 1)
        def _finalize():
            # Exact divide (pl.reciprocal(approx=True) was dropped for accuracy).
            o_ref[0] = (acc_ref[...] / l_ref[...]).astype(o_ref.dtype)

    return kernel


def _sublane_align(*dtypes):
    """Second-to-last block dim alignment for the given dtypes (8/16/32)."""
    return max(32 // jnp.dtype(dt).itemsize for dt in dtypes)


def _pick_tile(n, target, align):
    """Largest tile <= target that divides n and is a multiple of `align`,
    falling back to the full axis (full-extent blocks are always legal)."""
    if n <= target:
        return n
    t = (target // align) * align
    while t >= align:
        if n % t == 0:
            return t
        t -= align
    return n


def _vmem_limit_bytes():
    """Per-generation VMEM budget: ~100 MiB on 128-MiB parts (v5e/v6e),
    ~48 MiB on 64-MiB parts (v7x); conservative fallback if unqueryable."""
    try:
        cap = int(pltpu.get_tpu_info().vmem_capacity_bytes)
    except Exception:
        cap = 64 * 1024 * 1024
    return max(32 * 1024 * 1024, min(cap - 16 * 1024 * 1024, 100 * 1024 * 1024))


def attend(q, k, v, mask=None, attn_bias=None, *, q_tile=512, kv_tile=512,
           fuse_dtype=None):
    """q, k, v: (b, h, n, d).  mask: bool, attn_bias: float, both
    broadcastable to (b, h, n, n).  Returns (b, h, n, d) in q.dtype."""
    b, h, n, d = q.shape
    bh = b * h
    out_dtype = q.dtype
    scale = float(d) ** (-0.5)

    qf = q.reshape(bh, n, d)
    kf = k.reshape(bh, n, d)
    vf = v.reshape(bh, n, d)

    # ---- Fuse mask and bias into a single additive tensor (perf review). ----
    fused = None
    if attn_bias is not None and mask is not None:
        fdt = jnp.dtype(fuse_dtype) if fuse_dtype is not None else attn_bias.dtype
        fused = jnp.where(mask, attn_bias, _MASK_VALUE).astype(fdt)
    elif attn_bias is not None:
        fdt = jnp.dtype(fuse_dtype) if fuse_dtype is not None else attn_bias.dtype
        fused = attn_bias.astype(fdt)
    elif mask is not None:
        # 0.0 and -BIG are exactly representable in bf16 -> half the bytes,
        # zero numerical error.
        fdt = jnp.dtype(fuse_dtype) if fuse_dtype is not None else jnp.dtype(jnp.bfloat16)
        fused = jnp.where(mask, 0.0, _MASK_VALUE).astype(fdt)
    has_bias = fused is not None
    if has_bias:
        fused = jnp.broadcast_to(fused, (b, h, n, n)).reshape(bh, n, n)

    # ---- Tile selection (dtype-aware sublane alignment, per-gen VMEM cap). --
    align_dts = [q.dtype, out_dtype] + ([fused.dtype] if has_bias else [])
    tq_align = _sublane_align(*align_dts)
    tq = _pick_tile(n, q_tile, tq_align)
    tkv = _pick_tile(n, kv_tile, 128)

    vmem_limit = _vmem_limit_bytes()
    q_is = jnp.dtype(q.dtype).itemsize
    o_is = jnp.dtype(out_dtype).itemsize
    f_is = jnp.dtype(fused.dtype).itemsize if has_bias else 0

    def _vmem_est(tq_, tkv_):
        e = 2 * tq_ * d * q_is            # q (double-buffered)
        e += 2 * 2 * tkv_ * d * q_is      # k, v
        e += 2 * tq_ * d * o_is           # out
        if has_bias:
            e += 2 * tq_ * tkv_ * f_is    # fused bias/mask
        e += tq_ * d * q_is               # scaled-q scratch
        e += tq_ * d * 4 + 2 * tq_ * 4    # f32 acc + m + l
        return e

    while _vmem_est(tq, tkv) > 0.6 * vmem_limit:
        if tkv > 128 and n % (tkv // 2) == 0 and (tkv // 2) % 128 == 0:
            tkv //= 2
        elif tq > tq_align and n % (tq // 2) == 0 and (tq // 2) % tq_align == 0:
            tq //= 2
        else:
            break

    # NOTE(v7x): keep bh (and the q axis) even where possible so the two
    # TensorCores can split the "parallel" grid axes.
    grid = (bh, n // tq, n // tkv)

    inputs = [qf, kf, vf]
    in_specs = [
        pl.BlockSpec((1, tq, d), lambda bi, qi, ki: (bi, qi, 0)),
        pl.BlockSpec((1, tkv, d), lambda bi, qi, ki: (bi, ki, 0)),
        pl.BlockSpec((1, tkv, d), lambda bi, qi, ki: (bi, ki, 0)),
    ]
    if has_bias:
        inputs.append(fused)
        in_specs.append(
            pl.BlockSpec((1, tq, tkv), lambda bi, qi, ki: (bi, qi, ki)))

    # cost estimate: K/V are re-streamed once per q tile.
    kv_passes = n // tq
    bytes_accessed = (
        qf.size * q_is
        + (kf.size + vf.size) * q_is * kv_passes
        + bh * n * d * o_is
        + (fused.size * f_is if has_bias else 0))

    kernel = _make_attend_kernel(has_bias, scale)

    out = pl.pallas_call(
        kernel,
        out_shape=jax.ShapeDtypeStruct((bh, n, d), out_dtype),
        grid_spec=pltpu.PrefetchScalarGridSpec(
            num_scalar_prefetch=0,
            grid=grid,
            in_specs=in_specs,
            out_specs=pl.BlockSpec((1, tq, d), lambda bi, qi, ki: (bi, qi, 0)),
            scratch_shapes=[
                pltpu.VMEM((tq, d), q.dtype),      # scaled q (per q tile)
                pltpu.VMEM((tq, 1), jnp.float32),  # running max m
                pltpu.VMEM((tq, 1), jnp.float32),  # running denom l
                pltpu.VMEM((tq, d), jnp.float32),  # f32 accumulator
            ],
        ),
        compiler_params=pltpu.CompilerParams(
            dimension_semantics=("parallel", "parallel", "arbitrary"),
            vmem_limit_bytes=int(vmem_limit),
        ),
        cost_estimate=pl.CostEstimate(
            flops=4 * bh * n * n * d,
            transcendentals=bh * n * n,
            bytes_accessed=int(bytes_accessed),
        ),
    )(*inputs)

    return out.reshape(b, h, n, d)


def _attend_ref(q, k, v, mask=None, attn_bias=None):
    scale = q.shape[-1] ** (-0.5)
    sim = jnp.einsum('bhid,bhjd->bhij', q.astype(jnp.float32),
                     k.astype(jnp.float32)) * scale
    if attn_bias is not None:
        sim = sim + attn_bias
    if mask is not None:
        sim = jnp.where(mask, sim, -jnp.finfo(sim.dtype).max)
    attn = jax.nn.softmax(sim, axis=-1)
    return jnp.einsum('bhij,bhjd->bhid', attn, v.astype(jnp.float32))


if __name__ == "__main__":
    key = jax.random.PRNGKey(0)
    b, h, n, d = 2, 2, 8, 32
    kq, kk, kvk, kb, km = jax.random.split(key, 5)

    q = jax.random.normal(kq, (b, h, n, d), dtype=jnp.float32)
    k = jax.random.normal(kk, (b, h, n, d), dtype=jnp.float32)
    v = jax.random.normal(kvk, (b, h, n, d), dtype=jnp.float32)
    attn_bias = 0.1 * jax.random.normal(kb, (b, h, n, n), dtype=jnp.float32)
    mask = jax.random.uniform(km, (b, h, n, n)) > 0.2  # bool mask

    # 1) bias + mask (fused f32 additive tensor).
    out = attend(q, k, v, mask=mask, attn_bias=attn_bias)
    jax.block_until_ready(out)
    ref = _attend_ref(q, k, v, mask=mask, attn_bias=attn_bias)
    assert out.shape == (b, h, n, d)
    assert jnp.allclose(out, ref, atol=2e-3, rtol=2e-3), "mismatch (bias+mask)"

    # 2) plain fast path: no bias, no mask (no dense (n,n) DMA at all).
    out2 = attend(q, k, v)
    jax.block_until_ready(out2)
    ref2 = _attend_ref(q, k, v)
    assert jnp.allclose(out2, ref2, atol=2e-3, rtol=2e-3), "mismatch (plain)"

    # 3) bf16 q/k/v + mask-only (exact bf16 fused mask); looser tolerance for
    #    the bf16 MXU path (reference uses the same cast-back values).
    qb, kb16, vb = (t.astype(jnp.bfloat16) for t in (q, k, v))
    out3 = attend(qb, kb16, vb, mask=mask)
    jax.block_until_ready(out3)
    ref3 = _attend_ref(qb, kb16, vb, mask=mask)
    assert jnp.allclose(out3.astype(jnp.float32), ref3,
                        atol=3e-2, rtol=3e-2), "mismatch (bf16)"

    print("KERNEL_OK")
</pallas_src>

<mosaic_0001>
module attributes {stable_mosaic.version = 11 : i64} {
  func.func @kernel(%arg0: i32, %arg1: i32, %arg2: i32, %arg3: memref<1x8x32xf32, #tpu.memory_space<vmem>>, %arg4: memref<1x8x32xf32, #tpu.memory_space<vmem>>, %arg5: memref<1x8x32xf32, #tpu.memory_space<vmem>>, %arg6: memref<1x8x8xf32, #tpu.memory_space<vmem>>, %arg7: memref<1x8x32xf32, #tpu.memory_space<vmem>>, %arg8: memref<8x32xf32, #tpu.memory_space<vmem>>, %arg9: memref<8x1xf32, #tpu.memory_space<vmem>>, %arg10: memref<8x1xf32, #tpu.memory_space<vmem>>, %arg11: memref<8x32xf32, #tpu.memory_space<vmem>>) attributes {dimension_semantics = [#tpu.dimension_semantics<parallel>, #tpu.dimension_semantics<parallel>, #tpu.dimension_semantics<arbitrary>], iteration_bounds = array<i64: 4, 1, 1>, scalar_prefetch = 0 : i64, scratch_operands = 4 : i64, tpu.core_type = #tpu.core_type<tc>, window_params = [{transform_indices = @transform_0, window_bounds = array<i64: 1, 8, 32>}, {transform_indices = @transform_1, window_bounds = array<i64: 1, 8, 32>}, {transform_indices = @transform_2, window_bounds = array<i64: 1, 8, 32>}, {transform_indices = @transform_3, window_bounds = array<i64: 1, 8, 8>}, {transform_indices = @transform_4, window_bounds = array<i64: 1, 8, 32>}]} {
    %c0_i32 = arith.constant 0 : i32
    %0 = arith.cmpi eq, %arg2, %c0_i32 : i32
    %1 = arith.extui %0 : i1 to i32
    %c0_i32_0 = arith.constant 0 : i32
    %2 = arith.cmpi ne, %1, %c0_i32_0 : i32
    scf.if %2 {
      %c0_28 = arith.constant 0 : index
      %c0_29 = arith.constant 0 : index
      %c0_30 = arith.constant 0 : index
      %37 = vector.load %arg3[%c0_28, %c0_29, %c0_30] : memref<1x8x32xf32, #tpu.memory_space<vmem>>, vector<1x8x32xf32>
      %38 = vector.shape_cast %37 : vector<1x8x32xf32> to vector<8x32xf32>
      %cst_31 = arith.constant 0.176776692 : f32
      %39 = vector.broadcast %cst_31 : f32 to vector<8x32xf32>
      %40 = arith.mulf %38, %39 : vector<8x32xf32>
      %c0_32 = arith.constant 0 : index
      %c0_33 = arith.constant 0 : index
      %41 = vector.load %arg8[%c0_32, %c0_33] : memref<8x32xf32, #tpu.memory_space<vmem>>, vector<8x32xf32>
      tpu.vector_store %arg8[%c0_32, %c0_33], %40 {strides = array<i32>} : memref<8x32xf32, #tpu.memory_space<vmem>>, vector<8x32xf32>,
      %cst_34 = arith.constant 0xFF800000 : f32
      %42 = vector.broadcast %cst_34 : f32 to vector<8x1xf32>
      %c0_35 = arith.constant 0 : index
      %c0_36 = arith.constant 0 : index
      %43 = vector.load %arg9[%c0_35, %c0_36] : memref<8x1xf32, #tpu.memory_space<vmem>>, vector<8x1xf32>
      tpu.vector_store %arg9[%c0_35, %c0_36], %42 {strides = array<i32>} : memref<8x1xf32, #tpu.memory_space<vmem>>, vector<8x1xf32>,
      %cst_37 = arith.constant 0.000000e+00 : f32
      %44 = vector.broadcast %cst_37 : f32 to vector<8x1xf32>
      %c0_38 = arith.constant 0 : index
      %c0_39 = arith.constant 0 : index
      %45 = vector.load %arg10[%c0_38, %c0_39] : memref<8x1xf32, #tpu.memory_space<vmem>>, vector<8x1xf32>
      tpu.vector_store %arg10[%c0_38, %c0_39], %44 {strides = array<i32>} : memref<8x1xf32, #tpu.memory_space<vmem>>, vector<8x1xf32>,
      %cst_40 = arith.constant 0.000000e+00 : f32
      %46 = vector.broadcast %cst_40 : f32 to vector<8x32xf32>
      %c0_41 = arith.constant 0 : index
      %c0_42 = arith.constant 0 : index
      %47 = vector.load %arg11[%c0_41, %c0_42] : memref<8x32xf32, #tpu.memory_space<vmem>>, vector<8x32xf32>
      tpu.vector_store %arg11[%c0_41, %c0_42], %46 {strides = array<i32>} : memref<8x32xf32, #tpu.memory_space<vmem>>, vector<8x32xf32>,
    } else {
    }
    %c0 = arith.constant 0 : index
    %c0_1 = arith.constant 0 : index
    %3 = vector.load %arg8[%c0, %c0_1] : memref<8x32xf32, #tpu.memory_space<vmem>>, vector<8x32xf32>
    %c0_2 = arith.constant 0 : index
    %c0_3 = arith.constant 0 : index
    %c0_4 = arith.constant 0 : index
    %4 = vector.load %arg4[%c0_2, %c0_3, %c0_4] : memref<1x8x32xf32, #tpu.memory_space<vmem>>, vector<1x8x32xf32>
    %5 = vector.shape_cast %4 : vector<1x8x32xf32> to vector<8x32xf32>
    %cst = arith.constant dense<0.000000e+00> : vector<8x8xf32>
    %6 = tpu.matmul %3, %5, %cst {dimension_numbers = #tpu.dot_dimension_numbers<[1], [1], [0], [0], [0, 0, 1, 0], [], []>} : vector<8x32xf32>, vector<8x32xf32>, vector<8x8xf32> -> vector<8x8xf32>
    %c0_5 = arith.constant 0 : index
    %c0_6 = arith.constant 0 : index
    %c0_7 = arith.constant 0 : index
    %7 = vector.load %arg6[%c0_5, %c0_6, %c0_7] : memref<1x8x8xf32, #tpu.memory_space<vmem>>, vector<1x8x8xf32>
    %8 = vector.shape_cast %7 : vector<1x8x8xf32> to vector<8x8xf32>
    %9 = arith.addf %6, %8 : vector<8x8xf32>
    %c0_8 = arith.constant 0 : index
    %c0_9 = arith.constant 0 : index
    %10 = vector.load %arg9[%c0_8, %c0_9] : memref<8x1xf32, #tpu.memory_space<vmem>>, vector<8x1xf32>
    %cst_10 = arith.constant dense<0xFF800000> : vector<8xf32>
    %11 = vector.multi_reduction <maximumf>, %9, %cst_10 [1] : vector<8x8xf32> to vector<8xf32>
    %12 = vector.shape_cast %11 : vector<8xf32> to vector<8x1xf32>
    %13 = arith.maximumf %10, %12 : vector<8x1xf32>
    %14 = arith.subf %10, %13 : vector<8x1xf32>
    %15 = math.exp %14 : vector<8x1xf32>
    %16 = vector.broadcast %13 : vector<8x1xf32> to vector<8x8xf32>
    %17 = arith.subf %9, %16 : vector<8x8xf32>
    %18 = math.exp %17 : vector<8x8xf32>
    %c0_11 = arith.constant 0 : index
    %c0_12 = arith.constant 0 : index
    %19 = vector.load %arg10[%c0_11, %c0_12] : memref<8x1xf32, #tpu.memory_space<vmem>>, vector<8x1xf32>
    %20 = arith.mulf %15, %19 : vector<8x1xf32>
    %cst_13 = arith.constant dense<0.000000e+00> : vector<8xf32>
    %21 = vector.multi_reduction <add>, %18, %cst_13 [1] : vector<8x8xf32> to vector<8xf32>
    %22 = vector.shape_cast %21 : vector<8xf32> to vector<8x1xf32>
    %23 = arith.addf %20, %22 : vector<8x1xf32>
    %c0_14 = arith.constant 0 : index
    %c0_15 = arith.constant 0 : index
    %24 = vector.load %arg10[%c0_14, %c0_15] : memref<8x1xf32, #tpu.memory_space<vmem>>, vector<8x1xf32>
    tpu.vector_store %arg10[%c0_14, %c0_15], %23 {strides = array<i32>} : memref<8x1xf32, #tpu.memory_space<vmem>>, vector<8x1xf32>,
    %c0_16 = arith.constant 0 : index
    %c0_17 = arith.constant 0 : index
    %25 = vector.load %arg11[%c0_16, %c0_17] : memref<8x32xf32, #tpu.memory_space<vmem>>, vector<8x32xf32>
    %26 = vector.broadcast %15 : vector<8x1xf32> to vector<8x32xf32>
    %27 = arith.mulf %26, %25 : vector<8x32xf32>
    %c0_18 = arith.constant 0 : index
    %c0_19 = arith.constant 0 : index
    %c0_20 = arith.constant 0 : index
    %28 = vector.load %arg5[%c0_18, %c0_19, %c0_20] : memref<1x8x32xf32, #tpu.memory_space<vmem>>, vector<1x8x32xf32>
    %29 = vector.shape_cast %28 : vector<1x8x32xf32> to vector<8x32xf32>
    %cst_21 = arith.constant dense<0.000000e+00> : vector<8x32xf32>
    %30 = tpu.matmul %18, %29, %cst_21 {dimension_numbers = #tpu.dot_dimension_numbers<[1], [0], [0], [1], [0, 0, 1, 1], [], []>} : vector<8x8xf32>, vector<8x32xf32>, vector<8x32xf32> -> vector<8x32xf32>
    %31 = arith.addf %27, %30 : vector<8x32xf32>
    %c0_22 = arith.constant 0 : index
    %c0_23 = arith.constant 0 : index
    %32 = vector.load %arg11[%c0_22, %c0_23] : memref<8x32xf32, #tpu.memory_space<vmem>>, vector<8x32xf32>
    tpu.vector_store %arg11[%c0_22, %c0_23], %31 {strides = array<i32>} : memref<8x32xf32, #tpu.memory_space<vmem>>, vector<8x32xf32>,
    %c0_24 = arith.constant 0 : index
    %c0_25 = arith.constant 0 : index
    %33 = vector.load %arg9[%c0_24, %c0_25] : memref<8x1xf32, #tpu.memory_space<vmem>>, vector<8x1xf32>
    tpu.vector_store %arg9[%c0_24, %c0_25], %13 {strides = array<i32>} : memref<8x1xf32, #tpu.memory_space<vmem>>, vector<8x1xf32>,
    %c0_i32_26 = arith.constant 0 : i32
    %34 = arith.cmpi eq, %arg2, %c0_i32_26 : i32
    %35 = arith.extui %34 : i1 to i32
    %c0_i32_27 = arith.constant 0 : i32
    %36 = arith.cmpi ne, %35, %c0_i32_27 : i32
    scf.if %36 {
      %c0_28 = arith.constant 0 : index
      %c0_29 = arith.constant 0 : index
      %37 = vector.load %arg11[%c0_28, %c0_29] : memref<8x32xf32, #tpu.memory_space<vmem>>, vector<8x32xf32>
      %c0_30 = arith.constant 0 : index
      %c0_31 = arith.constant 0 : index
      %38 = vector.load %arg10[%c0_30, %c0_31] : memref<8x1xf32, #tpu.memory_space<vmem>>, vector<8x1xf32>
      %39 = vector.broadcast %38 : vector<8x1xf32> to vector<8x32xf32>
      %40 = arith.divf %37, %39 : vector<8x32xf32>
      %c0_32 = arith.constant 0 : index
      %c0_33 = arith.constant 0 : index
      %c0_34 = arith.constant 0 : index
      %41 = vector.load %arg7[%c0_32, %c0_33, %c0_34] : memref<1x8x32xf32, #tpu.memory_space<vmem>>, vector<1x8x32xf32>
      %42 = vector.shape_cast %41 : vector<1x8x32xf32> to vector<8x32xf32>
      %43 = vector.shape_cast %40 : vector<8x32xf32> to vector<1x8x32xf32>
      tpu.vector_store %arg7[%c0_32, %c0_33, %c0_34], %43 {strides = array<i32>} : memref<1x8x32xf32, #tpu.memory_space<vmem>>, vector<1x8x32xf32>,
    } else {
    }
    return
  }
  func.func @transform_0(%arg0: i32, %arg1: i32, %arg2: i32) -> (i32, i32, i32) {
    %c0_i32 = arith.constant 0 : i32
    %c0_i32_0 = arith.constant 0 : i32
    return %arg0, %arg1, %c0_i32 : i32, i32, i32
  }
  func.func @transform_1(%arg0: i32, %arg1: i32, %arg2: i32) -> (i32, i32, i32) {
    %c0_i32 = arith.constant 0 : i32
    %c0_i32_0 = arith.constant 0 : i32
    return %arg0, %arg2, %c0_i32 : i32, i32, i32
  }
  func.func @transform_2(%arg0: i32, %arg1: i32, %arg2: i32) -> (i32, i32, i32) {
    %c0_i32 = arith.constant 0 : i32
    %c0_i32_0 = arith.constant 0 : i32
    return %arg0, %arg2, %c0_i32 : i32, i32, i32
  }
  func.func @transform_3(%arg0: i32, %arg1: i32, %arg2: i32) -> (i32, i32, i32) {
    %c0_i32 = arith.constant 0 : i32
    return %arg0, %arg1, %arg2 : i32, i32, i32
  }
  func.func @transform_4(%arg0: i32, %arg1: i32, %arg2: i32) -> (i32, i32, i32) {
    %c0_i32 = arith.constant 0 : i32
    %c0_i32_0 = arith.constant 0 : i32
    return %arg0, %arg1, %c0_i32 : i32, i32, i32
  }
}

</mosaic_0001>

<bundles_post_ra>
// kernel: tpu_custom_call.1
= control target key start
LH: loop header
LB: loop body
LE: loop exit
PB: predicated region body
PF: predicated region fallthrough
CT: control target
= control target key end

     0   :  { %s1421_s0 = inlined_call_operand.hbm [shape: f32[4,8,32], index: 0, kind: input, shape index: {}]   ;;  %s1422_s1 = inlined_call_operand.hbm [shape: f32[4,8,32], index: 1, kind: input, shape index: {}]   ;;  %s1423_s2 = inlined_call_operand.hbm [shape: f32[4,8,32], index: 2, kind: input, shape index: {}]   ;;  %s1424_s3 = inlined_call_operand.hbm [shape: f32[4,8,8], index: 3, kind: input, shape index: {}]   ;;  %s1425_s4 = inlined_call_operand.hbm [shape: f32[4,8,32], index: 4, kind: output, shape index: {}]  }
   0x1   :  { %1434 = sst [smem:[#allocation24_spill]] %s1422_s1 }
   0x2   :  { %9 = vsyncpa [#allocation7], 0 }
   0x3   :  { %11 = vsyncpa [#allocation7 + $0x1], 0 }
   0x4   :  { %12 = vsyncpa [#allocation10], 0 }
   0x5   :  { %14 = vsyncpa [#allocation10 + $0x1], 0 }
   0x6   :  { %15 = vsyncpa [#allocation13], 0 }
   0x7   :  { %17 = vsyncpa [#allocation13 + $0x1], 0 }
   0x8   :  { %18 = vsyncpa [#allocation8], 0 }
   0x9   :  { %20 = vsyncpa [#allocation8 + $0x1], 0  ;;  %s1113_s15 = smov 0   ;;  %s1115_s16 = smov 0  }
   0xa   :  { %s1117_s17 = smov 0   ;;  %s1119_s18 = smov 0  }
   0xb   :  { %s1121_s19 = smov 0   ;;  %s1123_s20 = smov 0  }
   0xc LB: > { %1435 = sst [smem:[#allocation19_spill]] %s1065_s17  ;;  %s1144_s21 = sadd.s32 4294967295, %s1077_s20   ;;  %s1077_s20 = sphi %s1123_s20, %s26_s20   ;;  %s1073_s19 = sphi %s1121_s19, %s1460_s19   ;;  %s1069_s18 = sphi %s1119_s18, %s1459_s18   ;;  %s1065_s17 = sphi %s1117_s17, %s1458_s17   ;;  %s1061_s16 = sphi %s1115_s16, %s1462_s16   ;;  %s1057_s15 = sphi %s1113_s15, %s1461_s15  }
   0xd   : > { %1436 = sst [smem:[#allocation20_spill]] %s1073_s19  ;;  %s740_s22 = sadd.s32 4294967294, %s1077_s20  }
   0xe   : > { %s45_s23 = sadd.s32 1, %s1073_s19  ;;  %s54_s24 = sadd.s32 1, %s1065_s17 }
   0xf   : > { %p47_p0 = scmp.ge.s32.totalorder %s45_s23, 4  ;;  %p61_p1 = scmp.ne.s32.totalorder %s1065_s17, %s1061_s16 }
  0x10   : > { %p62_p2 = scmp.eq.s32.totalorder %s1077_s20, 0  ;;  %p67_p3 = scmp.ne.s32.totalorder %s1061_s16, %s1057_s15 }
  0x11   : > { %s1464_s23 = smov (%p47_p0, %s45_s23), 0  ;;  %p68_p5 = scmp.eq.s32.totalorder %s1144_s21, 0 }
  0x12   : > { %1437 = sst [smem:[#allocation21_spill]] %s1464_s23  ;;  %p1156_p4 = por %p62_p2, %p61_p1 }
  0x13   : > { %s49_s26 = ssub.s32 %s1073_s19, %s1464_s23  ;;  %p179_p6 = scmp.eq.s32.totalorder %s1144_s21, 3 }
  0x14   : > { %p52_p7 = scmp.eq.s32.totalorder %s49_s26, 0  ;;  %p1164_p8 = por %p68_p5, %p67_p3 }
  0x15   : > { %p1168_p9 = por %p179_p6, %p61_p1  ;;  %p185_p10 = scmp.eq.s32.totalorder %s740_s22, 3 }
  0x16   : > { %s1439_s27 = scalar_select %p1164_p8, 1, 0 }
  0x17   : > { %s1440_s28 = scalar_select %p1168_p9, 1, 0 }
  0x18   : > { %s1173_s29 = scalar_select %p52_p7, %s1065_s17, %s54_s24  }
  0x19   : > { %p1175_p11 = por %p185_p10, %p67_p3  ;;  %p805_p12 = scmp.lt.s32.totalorder %s1077_s20, 4 }
  0x1a   : > { %1441 = sst [smem:[#allocation22_spill]] %s1173_s29  ;;  %s1181_s5 = sand.u32 1, %s1065_s17  }
  0x1b   : > { %s1442_s30 = scalar_select %p1175_p11, 1, 0 }
  0x1c   : > { %s1184_s6 = sshll.u32 %s1181_s5, 3  ;;  %s1187_s7 = sshll.u32 %s1073_s19, 7 }
  0x1d   : > { %1443 = sst [smem:[#allocation23_spill]] %s1442_s30  ;;  %p1191_p13 = pnand %p805_p12, %p1156_p4 }
  0x1e   : > { %s224_s9 = sand.u32 1, %s1077_s20   ;;  %s1445_s1 = sld [smem:[#allocation24_spill]] }
  0x1f   : > { %s1444_s8 = scalar_select %p1191_p13, 1, 0 }
  0x20   : > { %s228_s13 = scalar_lea.vmem [#allocation9], %s1184_s6  ;;  %s1207_s22 = scalar_lea.sflag [#allocation10], %s224_s9 }
  0x21   : > { %s236_s14 = sshll.u32 %s228_s13, 4  ;;  %p1213_p3 = pneg %p1191_p13  ;;  %s1204_s14 = int_to_ptr.vmem [resolvable:$true] %s236_s14 }
  0x24   : > { %s1200_s12 = scalar_lea.hbm %s1445_s1, %s1187_s7  ;;  %s872_s11 = scalar_lea.hbm %s1445_s1, 512 }
  0x25   : > { %s867_s24 = scalar_lea.hbm %s1200_s12, 128  ;;  %p873_p6 = scmp.lt.u32.totalorder %s1200_s12, %s1445_s1 }
  0x26   : > { %p868_p2 = scmp.ne.s32.totalorder %s1200_s12, %s867_s24  ;;  %p874_p7 = scmp.lt.u32.totalorder %s872_s11, %s867_s24 }
  0x27   : > { %p876_p12 = scmp.lt.u32.totalorder %s867_s24, %s1200_s12 }
  0x28   : > { %p870_p4 = pnand %p1213_p3, %p868_p2  ;;  %p875_p10 = por %p874_p7, %p873_p6 }
  0x2a   : > { %p871_p5 = pneg %p870_p4  ;;  %p877_p0 = por %p876_p12, %p875_p10 }
  0x2c   : > { %p878_p1 = pnand %p877_p0, %p871_p5 }
  0x2e   : > { %881 = shalt.err (!%p878_p1)
}
  0x2f   : > { %s882_s9 = scalar_lea.vmem %s1204_s14, 128  ;;  %s1079_s26 = smov [#allocation9]  }
  0x30   : > { %p883_p2 = scmp.ne.s32.totalorder %s1204_s14, %s882_s9  ;;  %s887_s10 = sshll.u32 %s1079_s26, 4  ;;  %s888_s10 = int_to_ptr.vmem [resolvable:$false] %s887_s10 }
  0x31   : > { %s889_s23 = scalar_lea.vmem %s888_s10, 256  ;;  %p890_p9 = scmp.lt.s32.totalorder %s1204_s14, %s888_s10 }
  0x32   : > { %p885_p4 = pnand %p883_p2, %p1213_p3  ;;  %p891_p8 = scmp.lt.s32.totalorder %s889_s23, %s882_s9 }
  0x34   : > { %p886_p11 = pneg %p885_p4  ;;  %p892_p6 = por %p891_p8, %p890_p9 }
  0x36   : > { %p893_p7 = pnand %p892_p6, %p886_p11 }
  0x38   : > { %896 = shalt.err (!%p893_p7)
}
  0x39   : > { %794 = dma.hbm_to_vmem [thread:$0]  (!%p1191_p13), %s1200_s12, 128, %s1204_s14, %s1207_s22  }
  0x3a   : > { %p1447_p0 = scmp.lt.s32.totalorder %s1077_s20, 5  ;;  %p1448_p1 = scmp.ge.s32.totalorder %s1077_s20, 1 }
  0x3b   : > { %s1249_s9 = scalar_lea.hbm %s1421_s0, %s1187_s7  ;;  %s209_s26 = scalar_lea.vmem [#allocation6], %s1184_s6 }
  0x3c   : > { %p1241_p5 = pnand %p1448_p1, %p1447_p0  ;;  %s217_s10 = sshll.u32 %s209_s26, 4  ;;  %s1252_s10 = int_to_ptr.vmem [resolvable:$true] %s217_s10 }
  0x3d   : > { %s1258_s23 = scalar_lea.hbm %s1423_s2, %s1187_s7  ;;  %s206_s1 = scalar_lea.sflag [#allocation7], %s1181_s5 }
  0x3e   : > { %s1449_s24 = scalar_select %p1241_p5, 1, 0 }
  0x3f   : > { %s897_s19 = scalar_lea.hbm %s1249_s9, 128  ;;  %s902_s29 = scalar_lea.hbm %s1421_s0, 512 }
  0x40   : > { %p898_p8 = scmp.ne.s32.totalorder %s1249_s9, %s897_s19  ;;  %p903_p10 = scmp.lt.u32.totalorder %s1249_s9, %s1421_s0 }
  0x41   : > { %p904_p12 = scmp.lt.u32.totalorder %s902_s29, %s897_s19  ;;  %p906_p4 = scmp.lt.u32.totalorder %s897_s19, %s1249_s9 }
  0x42   : > { %p900_p9 = pnand %p898_p8, %p1213_p3 }
  0x43   : > { %p905_p2 = por %p904_p12, %p903_p10 }
  0x44   : > { %p901_p11 = pneg %p900_p9 }
  0x45   : > { %p907_p6 = por %p906_p4, %p905_p2 }
  0x47   : > { %p908_p7 = pnand %p907_p6, %p901_p11 }
  0x49   : > { %911 = shalt.err (!%p908_p7)
}
  0x4a   : > { %s912_s26 = scalar_lea.vmem %s1252_s10, 128  ;;  %s1080_s12 = smov [#allocation6]  }
  0x4b   : > { %p913_p0 = scmp.ne.s32.totalorder %s1252_s10, %s912_s26  ;;  %s917_s14 = sshll.u32 %s1080_s12, 4  ;;  %s918_s14 = int_to_ptr.vmem [resolvable:$false] %s917_s14 }
  0x4c   : > { %s919_s17 = scalar_lea.vmem %s918_s14, 256  ;;  %p920_p9 = scmp.lt.s32.totalorder %s1252_s10, %s918_s14 }
  0x4d   : > { %p915_p1 = pnand %p913_p0, %p1213_p3  ;;  %p921_p5 = scmp.lt.s32.totalorder %s919_s17, %s912_s26 }
  0x4f   : > { %p916_p8 = pneg %p915_p1  ;;  %p922_p10 = por %p921_p5, %p920_p9 }
  0x51   : > { %p923_p12 = pnand %p922_p10, %p916_p8 }
  0x53   : > { %926 = shalt.err (!%p923_p12)
}
  0x54   : > { %791 = dma.hbm_to_vmem [thread:$0]  (!%p1191_p13), %s1249_s9, 128, %s1252_s10, %s206_s1  }
  0x55   : > { %s247_s19 = scalar_lea.vmem [#allocation11], %s1184_s6  ;;  %s927_s30 = scalar_lea.hbm %s1258_s23, 128 }
  0x56   : > { %s255_s29 = sshll.u32 %s247_s19, 4  ;;  %p928_p11 = scmp.ne.s32.totalorder %s1258_s23, %s927_s30  ;;  %s256_s29 = int_to_ptr.vmem [resolvable:$true] %s255_s29 }
  0x57   : > { %s932_s26 = scalar_lea.hbm %s1423_s2, 512  ;;  %p933_p4 = scmp.lt.u32.totalorder %s1258_s23, %s1423_s2 }
  0x58   : > { %p930_p5 = pnand %p928_p11, %p1213_p3  ;;  %p934_p6 = scmp.lt.u32.totalorder %s932_s26, %s927_s30 }
  0x59   : > { %p936_p0 = scmp.lt.u32.totalorder %s927_s30, %s1258_s23 }
  0x5a   : > { %p931_p2 = pneg %p930_p5  ;;  %p935_p7 = por %p934_p6, %p933_p4 }
  0x5c   : > { %p937_p1 = por %p936_p0, %p935_p7 }
  0x5e   : > { %p938_p8 = pnand %p937_p1, %p931_p2 }
  0x60   : > { %941 = shalt.err (!%p938_p8)
}
  0x61   : > { %s942_s1 = scalar_lea.vmem %s256_s29, 128  ;;  %s1081_s9 = smov [#allocation11]  }
  0x62   : > { %p943_p9 = scmp.ne.s32.totalorder %s256_s29, %s942_s1  ;;  %s947_s10 = sshll.u32 %s1081_s9, 4  ;;  %s948_s10 = int_to_ptr.vmem [resolvable:$false] %s947_s10 }
  0x63   : > { %s949_s17 = scalar_lea.vmem %s948_s10, 256  ;;  %p950_p11 = scmp.lt.s32.totalorder %s256_s29, %s948_s10 }
  0x64   : > { %p945_p10 = pnand %p943_p9, %p1213_p3  ;;  %p951_p5 = scmp.lt.s32.totalorder %s949_s17, %s942_s1 }
  0x66   : > { %p946_p12 = pneg %p945_p10  ;;  %p952_p13 = por %p951_p5, %p950_p11 }
  0x68   : > { %p953_p4 = pnand %p952_p13, %p946_p12 }
  0x6a   : > { %956 = shalt.err (!%p953_p4)
}
  0x6b   : > { %p1450_p6 = scmp.ne.s32.totalorder %s1444_s8, 0  ;;  %s1305_s11 = scalar_lea.hbm %s1424_s3, %s1187_s7 }
  0x6c   : > { %s266_s13 = scalar_lea.vmem [#allocation12], %s1184_s6  ;;  %s263_s12 = scalar_lea.sflag [#allocation13], %s1181_s5 }
  0x6d   : > { %797 = dma.hbm_to_vmem [thread:$0]  (!%p1450_p6), %s1258_s23, 128, %s256_s29, %s1207_s22  }
  0x6e   : > { %s275_s26 = sshll.u32 %s266_s13, 4  ;;  %s957_s14 = scalar_lea.hbm %s1305_s11, 128  ;;  %s276_s26 = int_to_ptr.vmem [resolvable:$true] %s275_s26 }
  0x6f   : > { %p958_p13 = scmp.ne.s32.totalorder %s1305_s11, %s957_s14  ;;  %s962_s23 = scalar_lea.hbm %s1424_s3, 512 }
  0x70   : > { %p963_p0 = scmp.lt.u32.totalorder %s1305_s11, %s1424_s3  ;;  %p964_p1 = scmp.lt.u32.totalorder %s962_s23, %s957_s14 }
  0x71   : > { %p960_p2 = pnand %p958_p13, %p1213_p3  ;;  %p966_p9 = scmp.lt.u32.totalorder %s957_s14, %s1305_s11 }
  0x72   : > { %p965_p8 = por %p964_p1, %p963_p0 }
  0x73   : > { %p961_p7 = pneg %p960_p2 }
  0x74   : > { %p967_p10 = por %p966_p9, %p965_p8 }
  0x76   : > { %p968_p12 = pnand %p967_p10, %p961_p7 }
  0x78   : > { %971 = shalt.err (!%p968_p12)
}
  0x79   : > { %s972_s5 = scalar_lea.vmem %s276_s26, 128  ;;  %s1082_s6 = smov [#allocation12]  }
  0x7a   : > { %p973_p11 = scmp.ne.s32.totalorder %s276_s26, %s972_s5  ;;  %s977_s9 = sshll.u32 %s1082_s6, 4  ;;  %s978_s9 = int_to_ptr.vmem [resolvable:$false] %s977_s9 }
  0x7b   : > { %s979_s10 = scalar_lea.vmem %s978_s9, 256  ;;  %p980_p13 = scmp.lt.s32.totalorder %s276_s26, %s978_s9 }
  0x7c   : > { %p975_p5 = pnand %p973_p11, %p1213_p3  ;;  %p981_p2 = scmp.lt.s32.totalorder %s979_s10, %s972_s5 }
  0x7e   : > { %p976_p4 = pneg %p975_p5  ;;  %p982_p6 = por %p981_p2, %p980_p13 }
  0x80   : > { %p983_p0 = pnand %p982_p6, %p976_p4 }
  0x82   : > { %986 = shalt.err (!%p983_p0)
}
  0x83   : > { %p1451_p1 = scmp.ne.s32.totalorder %s1444_s8, 0  ;;  %p1452_p7 = scmp.ne.s32.totalorder %s1449_s24, 0 }
  0x84   : > { %s1329_s25 = sand.u32 (!%p1452_p7), 1, %s1061_s16   ;;  %p1453_p3 = scmp.ne.s32.totalorder (!%p1452_p7), %s1439_s27, 0 }
  0x85   : > { %800 = dma.hbm_to_vmem [thread:$0]  (!%p1451_p1), %s1305_s11, 128, %s276_s26, %s263_s12  }
  0x86   : > { %284 = sbr.rel (%p1452_p7) target bundleno = 969 (0x3c9), region = 36  ;;  %s1332_s17 = sshll.u32 (!%p1452_p7), %s1329_s25, 3 }
  0x87   : > { %s287_s19 = scalar_lea.sflag (!%p1452_p7), [#allocation7], %s1329_s25  ;;  %s290_s30 = scalar_lea.vmem (!%p1452_p7), [#allocation6], %s1332_s17 }
  0x8d   : > { %1040 = dma.done.wait (%p1453_p3), %s287_s19, 128  }
  0x8e   : > { %1042 = vsyncadd (%p1453_p3), %s287_s19, 4294967168  ;;  %s295_s8 = sand.u32 1, %s1144_s21   ;;  %s299_s11 = scalar_lea.vmem [#allocation9], %s1332_s17 }
  0x8f   : > { %s296_s24 = scalar_lea.sflag [#allocation10], %s295_s8 }
  0x90   : > { %1044 = dma.done.wait (%p1453_p3), %s296_s24, 256  }
  0x91   : > { %1046 = vsyncadd (%p1453_p3), %s296_s24, 4294967040  ;;  %s308_s13 = scalar_lea.vmem [#allocation11], %s1332_s17  ;;  %s314_s26 = scalar_lea.sflag [#allocation13], %s1329_s25 }
  0x92   : > { %s317_s12 = scalar_lea.vmem [#allocation12], %s1332_s17 }
  0x93   : > { %1048 = dma.done.wait (%p1453_p3), %s314_s26, 128  }
  0x94   : > { %1050 = vsyncadd (%p1453_p3), %s314_s26, 4294967168  ;;  %vm363_vm0 = vcmask 261120   ;;  %v1083_v0 = vmov 0.0   ;;  %vm1084_vm1 = vmmov 0   ;;  %v361_v1 = vld [vmem:[%s290_s30] sm:$0xff]  ;;  %v370_v2 = vld [vmem:[%s299_s11] sm:$0xff] }
  0x95   : > { %768 = vmatprep.subr.mxu0 %v1083_v0  ;;  %368 = vst.msk [vmem:[#allocation5] sm:$0xff] %vm363_vm0, %v1083_v0  ;;  %770 = vmatprep.mubr.msk.f32.mxu0 %vm1084_vm1, %v1083_v0  ;;  %v362_v3 = vmul.f32 0.17677669, %v361_v1  ;;  %vm365_vm2 = vcmask 7168   ;;  %v1085_v5 = vmov -inf   ;;  %v371_v6 = vld [vmem:[%s317_s12] sm:$0xff] }
  0x96   : > { %773 = vmatprep.subr.mxu1 %v1083_v0  ;;  %775 = vmatprep.mubr.msk.f32.mxu1 %vm1084_vm1, %v1083_v0  ;;  %366 = vst.msk [vmem:[#allocation3] sm:$0xff] %vm365_vm2, %v1085_v5  ;;  %367 = vst.msk [vmem:[#allocation4] sm:$0xff] %vm365_vm2, %v1083_v0  ;;  %vm450_vm3 = vcmask 64512   ;;  %v1086_v11 = vmov 0   ;;  %v481_v16 = vld [vmem:[%s308_s13] sm:$0xff]  ;;  %s761_s21 = sshll.u32 %s1069_s18, 7 }
  0x97   : > { %769 = vmatpush3.xpose.msk.msra.mxu0 %vm363_vm0, %v370_v2  ;;  %364 = vst.msk [vmem:[#allocation2] sm:$0xff] %vm363_vm0, %v362_v3  ;;  %859 = vset.pattern.permute.xlu0 %v1086_v11  ;;  %s356_s27 = scalar_lea.vmem [#allocation14], %s1332_s17  ;;  %s1372_s23 = scalar_lea.hbm %s1425_s4, %s761_s21 }
  0x98   : > { %860 = vset.pattern.permute.xlu1 %v1086_v11  ;;  %774 = vmatpush3.msra.mxu1 %v481_v16  ;;  %s586_s14 = sshll.u32 %s356_s27, 4  ;;  %s572_s29 = scalar_lea.sflag [#allocation8], %s1329_s25  ;;  %s1374_s14 = int_to_ptr.vmem [resolvable:$true] %s586_s14 }
  0x99   : > { %s987_s7 = scalar_lea.vmem %s1374_s14, 128  ;;  %p1454_p8 = scmp.ne.s32.totalorder %s1440_s28, 0 }
  0x9a   : > { %p988_p6 = scmp.ne.s32.totalorder %s1374_s14, %s987_s7  ;;  %s1087_s18 = smov [#allocation14]  }
  0x9b   : > { %s991_s5 = sshll.u32 %s1087_s18, 4  ;;  %s992_s5 = int_to_ptr.vmem [resolvable:$false] %s991_s5 }
  0x9c   : > { %v474_v29 = vld [vmem:[#allocation5] sm:$0xff]  ;;  %p989_p9 = pnand %p988_p6, %p1454_p8  ;;  %s993_s6 = scalar_lea.vmem %s992_s5, 256 }
  0x9d   : > { %v449_v12 = vld [vmem:[#allocation3] sm:$0xff]  ;;  %v466_v24 = vld [vmem:[#allocation4] sm:$0xff]  ;;  %p994_p12 = scmp.lt.s32.totalorder %s1374_s14, %s992_s5  ;;  %p995_p11 = scmp.lt.s32.totalorder %s993_s6, %s987_s7 }
  0x9e   : > { %v369_v4 = vld [vmem:[#allocation2] sm:$0xff]  ;;  %p990_p10 = pneg %p989_p9 }
  0x9f   : > { %771 = vmatmul.mubr.msk.f32.vlgmr.msra.gmra.mrb[0].mxu0 %vm363_vm0, %v369_v4  ;;  %p996_p5 = por %p995_p11, %p994_p12 }
  0xa1   : > { %p997_p4 = pnand %p996_p5, %p990_p10 }
 0x172   : > { %v445_v7 = vpop.f32.mrb[0].mxu0 }
 0x173   : > { %v446_v8 = vadd.f32 %v445_v7, %v371_v6  ;;  %v772_v9 = vpop.f32.mrb[1].mxu0 }
 0x175   : > { %v451_v10 = vsel %vm450_vm3, %v446_v8, -inf }
 0x176   : > { %452 = vmax.xlane.f32.xlu0 %v451_v10 }
 0x203   : > { %v453_v13 = vpop.xlane.xlu0 %452 }
 0x204   : > { %v454_v14 = vmax.f32 %v449_v12, %v453_v13 }
 0x206   : > { %v455_v15 = vsub.f32 %v449_v12, %v454_v14  ;;  %557 = vst.msk [vmem:[#allocation3] sm:$0xff] %vm365_vm2, %v454_v14  ;;  %460 = vperm.xlu0 %859, %v454_v14  }
 0x208   : > { %v456_v22 = vmul.f32 1.442695, %v455_v15 }
 0x285   : > { %v461_v17 = vpop.permute.xlu0 %460 }
 0x286   : > { %v463_v18 = vsub.f32 %v446_v8, %v461_v17 }
 0x288   : > { %v464_v19 = vmul.f32 1.442695, %v463_v18 }
 0x28a   : > { %861 = vpow2.f32 %v464_v19 }
 0x28b   : > { %863 = vpow2.f32 %v456_v22 }
 0x294   : > { %v862_v20 = vpop.eup %861 }
 0x295   : > { %776 = vmatmul.mubr.msk.f32.vlgmr.msra.gmra.mrb[0].mxu1 %vm450_vm3, %v862_v20  ;;  %v468_v21 = vsel %vm450_vm3, %v862_v20, 0.0  ;;  %v864_v23 = vpop.eup %863 }
 0x296   : > { %469 = vadd.xlane.f32.xlu1 %v468_v21  ;;  %v467_v25 = vmul.f32 %v864_v23, %v466_v24 }
 0x2a7   : > { %477 = vperm.xlu1 %860, %v864_v23  }
 0x323   : > { %v470_v26 = vpop.xlane.xlu1 %469 }
 0x324   : > { %v471_v27 = vadd.f32 %v470_v26, %v467_v25 }
 0x326   : > { %473 = vst.msk [vmem:[#allocation4] sm:$0xff] %vm365_vm2, %v471_v27 }
 0x327   : > { %v478_v30 = vpop.permute.xlu1 %477 }
 0x328   : > { %v480_v31 = vmul.f32 %v478_v30, %v474_v29 }
 0x32d   : > { %v562_v28 = vld [vmem:[#allocation4] sm:$0xff] }
 0x32e   : > { %565 = vperm.xlu1 %860, %v562_v28  }
 0x368   : > { %v551_v32 = vpop.f32.mrb[0].mxu1 }
 0x369   : > { %v555_v33 = vadd.f32 %v551_v32, %v480_v31  ;;  %v777_v34 = vpop.f32.mrb[1].mxu1 }
 0x36b   : > { %556 = vst.msk [vmem:[#allocation5] sm:$0xff] %vm363_vm0, %v555_v33 }
 0x372   : > { %v561_v37 = vld [vmem:[#allocation5] sm:$0xff] }
 0x3ad   : > { %v566_v35 = vpop.permute.xlu1 %565 }
 0x3ae   : > { %865 = vrcp.f32 %v566_v35 }
 0x3b8   : > { %v866_v36 = vpop.eup %865 }
 0x3b9   : > { %v569_v38 = vmul.f32 %v866_v36, %v561_v37 }
 0x3bb   : > { %570 = vst.msk [vmem:[%s356_s27] sm:$0xff] %vm363_vm0, %v569_v38 }
 0x3bc   : > { %1000 = shalt.err (!%p997_p4)
}
 0x3bd   : > { %s1001_s9 = scalar_lea.hbm %s1372_s23, 128  ;;  %s1005_s17 = scalar_lea.hbm %s1425_s4, 512 }
 0x3be   : > { %p1002_p13 = scmp.ne.s32.totalorder %s1372_s23, %s1001_s9  ;;  %p1006_p1 = scmp.lt.u32.totalorder %s1372_s23, %s1425_s4 }
 0x3bf   : > { %p1007_p7 = scmp.lt.u32.totalorder %s1005_s17, %s1001_s9  ;;  %p1009_p6 = scmp.lt.u32.totalorder %s1001_s9, %s1372_s23 }
 0x3c0   : > { %p1003_p2 = pnand %p1002_p13, %p1454_p8 }
 0x3c1   : > { %p1008_p3 = por %p1007_p7, %p1006_p1 }
 0x3c2   : > { %p1004_p0 = pneg %p1003_p2 }
 0x3c3   : > { %p1010_p9 = por %p1009_p6, %p1008_p3 }
 0x3c5   : > { %p1011_p10 = pnand %p1010_p9, %p1004_p0 }
 0x3c7   : > { %1014 = shalt.err (!%p1011_p10)
}
 0x3c8   : > { %786 = dma.vmem_to_hbm [thread:$0]  (%p1454_p8), %s1374_s14, 128, %s1372_s23, %s572_s29  }
 0x3c9 PF: > { %s1455_s8 = sld [smem:[#allocation23_spill]]  ;;  %p806_p12 = scmp.ge.s32.totalorder %s1077_s20, 2 }
 0x3ca   : > { %s598_s24 = sand.u32 1, %s1057_s15  }
 0x3cb   : > { %s599_s11 = scalar_lea.sflag [#allocation8], %s598_s24 }
 0x3cf   : > { %p1456_p11 = scmp.ne.s32.totalorder %s1455_s8, 0 }
 0x3d1   : > { %p802_p5 = pnand %p806_p12, %p1456_p11 }
 0x3d3   : > { %1052 = dma.done.wait (!%p802_p5), %s599_s11, 128  }
 0x3d4   : > { %1054 = vsyncadd (!%p802_p5), %s599_s11, 4294967168  ;;  %s26_s20 = sadd.s32 1, %s1077_s20   ;;  %s1457_s13 = sld [smem:[#allocation19_spill]] }
 0x3d5   : > { %p23_p4 = scmp.ge.s32.totalorder %s26_s20, 6   ;;  %s1458_s17 = sld [smem:[#allocation22_spill]] }
 0x3d6   : > { %s1459_s18 = sld [smem:[#allocation20_spill]]  ;;  %s1460_s19 = sld [smem:[#allocation21_spill]] }
 0x3d7   : > { %s1461_s15 = smov %s1061_s16  ;;  %25 = sbr.rel (!%p23_p4) target bundleno = 12 (0xc), region = 126 }
 0x3da   : > { %s1462_s16 = smov %s1457_s13 }
 0x3de   :  { %604 = vsyncpa [#allocation7], 1 }
 0x3df   :  { %606 = vsyncpa [#allocation7 + $0x1], 1 }
 0x3e0   :  { %607 = vsyncpa [#allocation10], 1 }
 0x3e1   :  { %609 = vsyncpa [#allocation10 + $0x1], 1 }
 0x3e2   :  { %610 = vsyncpa [#allocation13], 1 }
 0x3e3   :  { %612 = vsyncpa [#allocation13 + $0x1], 1 }
 0x3e4   :  { %613 = vsyncpa [#allocation8], 1 }
 0x3e5   :  { %615 = vsyncpa [#allocation8 + $0x1], 1 }

</bundles_post_ra>
